<compile_context>
chip_gen: v6e
topology: v6e:2x2x1
jax: 0.10.0
libtpu: 0.0.40
codegen_flags: <defaults>
</compile_context>

<pallas_src>
import functools

import jax
import jax.numpy as jnp
from jax.experimental import pallas as pl
from jax.experimental.pallas import tpu as pltpu


# ----------------------------------------------------------------------------
# Fused kernel: conv(3x3,"same") + bias + ReLU + global-avg-pool + CFN fc head
# ----------------------------------------------------------------------------

def _cfn_fused_kernel(x_ref, conv_w_ref, conv_b_ref, pool_ref, rep_ref,
                      cmask_ref, ssum_ref, fc_w_ref, fc_b_ref, y_ref):
    """One grid step = one block of P puzzles (P * num_crops crops).

    x_ref      [1, M_blk, 9*C]        bf16  im2col rows (crop-major, valid pos only)
    conv_w_ref [9*C, F]               bf16  conv taps, column j = t*C + c
    conv_b_ref [1, F]                 f32
    pool_ref   [P*nc, M_blk]          bf16  1/(h*w) on own-crop rows, else 0
    rep_ref    [F, nc*F]              bf16  feature replication (f' == f one-hot)
    cmask_ref  [P*nc, nc*F]           f32   crop one-hot over the crop-major slots
    ssum_ref   [P, P*nc]              f32   puzzle-membership row summation
    fc_w_ref   [nc*F, n_cls]          bf16  nn.Linear weight.T (crop-major input)
    fc_b_ref   [1, n_cls]             f32
    y_ref      [1, P, n_cls]          f32
    """
    # 1) 3x3 "same" conv as ONE K = 9*C matmul, fp32 bias + ReLU epilogue.
    act = jnp.dot(x_ref[0], conv_w_ref[...],
                  preferred_element_type=jnp.float32)            # [M_blk, F]
    act = jnp.maximum(act + conv_b_ref[...], 0.0)

    # 2) Global average pool on the MXU (bf16 operands, fp32 accumulation).
    pooled = jnp.dot(pool_ref[...], act.astype(jnp.bfloat16),
                     preferred_element_type=jnp.float32)         # [P*nc, F]

    # 3) Assemble the crop-major FC input rows with matmuls only (no reshape/tile):
    #    pooled_exp[r, c*F+f] = pooled[r, f] * (c == crop(r)).
    pooled_exp = jnp.dot(pooled.astype(jnp.bfloat16), rep_ref[...],
                         preferred_element_type=jnp.float32)     # [P*nc, nc*F]
    pooled_exp = pooled_exp * cmask_ref[...]

    # 4) CFN head: one K = num_crops*F dot, then sum the num_crops rows of each
    #    puzzle (tiny f32 dot) and add the bias once.
    per_crop = jnp.dot(pooled_exp.astype(jnp.bfloat16), fc_w_ref[...],
                       preferred_element_type=jnp.float32)       # [P*nc, n_cls]
    y = jnp.dot(ssum_ref[...], per_crop,
                preferred_element_type=jnp.float32) + fc_b_ref[...]   # [P, n_cls]
    y_ref[0] = y


# ----------------------------------------------------------------------------
# CFNNet forward (single pallas_call)
# ----------------------------------------------------------------------------

@functools.partial(jax.jit, static_argnames=("num_crops", "puzzles_per_block"))
def cfn_net_forward(x, params, num_crops, puzzles_per_block=1):
    """x: [N_imgs, C, H, W] with N_imgs = batch * num_crops.  Returns [y]."""
    conv_w = params["conv_w"]          # [9*C, F]             bf16
    conv_b = params["conv_b"]          # [1, F]               f32
    fc_w = params["fc_w"]              # [num_crops*F, n_cls] bf16
    fc_b = params["fc_b"]              # [1, n_cls]           f32

    n_imgs, chans, h, w = x.shape
    assert n_imgs % num_crops == 0
    batch = n_imgs // num_crops
    p_blk = puzzles_per_block
    assert batch % p_blk == 0
    n_blocks = batch // p_blk

    feat = conv_w.shape[1]
    n_cls = fc_w.shape[1]
    k9c = 9 * chans
    m_blk = p_blk * num_crops * h * w          # conv rows per grid step
    rows = p_blk * num_crops                   # pooled rows per grid step

    # --- lane-dense im2col in the wrapper (only valid output positions) -------
    x_pad = jnp.pad(x, ((0, 0), (0, 0), (1, 1), (1, 1)))            # [N, C, h+2, w+2]
    taps = [x_pad[:, :, dy:dy + h, dx:dx + w]
            for dy in range(3) for dx in range(3)]                  # 9 x [N, C, h, w]
    x_col = jnp.stack(taps, axis=1)                                 # [N, 9, C, h, w]
    x_col = jnp.transpose(x_col, (0, 3, 4, 1, 2))                   # [N, h, w, 9, C]
    x_col = x_col.reshape(n_blocks, m_blk, k9c).astype(jnp.bfloat16)

    # --- small constant structure matrices (VMEM-resident across grid steps) --
    crop_of_row = jnp.arange(rows) % num_crops
    puzzle_of_row = jnp.arange(rows) // num_crops
    # pool: row r averages the h*w conv rows of its own crop.
    col_owner = jnp.arange(m_blk) // (h * w)
    pool_mat = jnp.where(col_owner[None, :] == jnp.arange(rows)[:, None],
                         1.0 / (h * w), 0.0).astype(jnp.bfloat16)          # [rows, m_blk]
    # rep: copy the F features into every crop slot of the crop-major FC row.
    f_of_slot = jnp.arange(num_crops * feat) % feat
    rep_mat = (f_of_slot[None, :] == jnp.arange(feat)[:, None]
               ).astype(jnp.bfloat16)                                      # [F, nc*F]
    # cmask: each pooled row keeps only its own crop's slot.
    crop_of_slot = jnp.arange(num_crops * feat) // feat
    cmask = (crop_of_slot[None, :] == crop_of_row[:, None]
             ).astype(jnp.float32)                                         # [rows, nc*F]
    # ssum: puzzle p sums its num_crops per-crop FC contributions.
    ssum = (puzzle_of_row[None, :] == jnp.arange(p_blk)[:, None]
            ).astype(jnp.float32)                                          # [P, rows]

    flops = 2 * n_blocks * (m_blk * k9c * feat
                            + rows * m_blk * feat
                            + rows * feat * num_crops * feat
                            + rows * num_crops * feat * n_cls
                            + p_blk * rows * n_cls)
    bytes_accessed = (x_col.size * 2 + conv_w.size * 2 + fc_w.size * 2
                      + pool_mat.size * 2 + rep_mat.size * 2
                      + cmask.size * 4 + ssum.size * 4
                      + conv_b.size * 4 + fc_b.size * 4 + batch * n_cls * 4)

    y = pl.pallas_call(
        _cfn_fused_kernel,
        out_shape=jax.ShapeDtypeStruct((n_blocks, p_blk, n_cls), jnp.float32),
        grid_spec=pltpu.PrefetchScalarGridSpec(
            num_scalar_prefetch=0,
            grid=(n_blocks,),
            in_specs=[
                pl.BlockSpec((1, m_blk, k9c), lambda b: (b, 0, 0)),
                pl.BlockSpec((k9c, feat), lambda b: (0, 0)),
                pl.BlockSpec((1, feat), lambda b: (0, 0)),
                pl.BlockSpec((rows, m_blk), lambda b: (0, 0)),
                pl.BlockSpec((feat, num_crops * feat), lambda b: (0, 0)),
                pl.BlockSpec((rows, num_crops * feat), lambda b: (0, 0)),
                pl.BlockSpec((p_blk, rows), lambda b: (0, 0)),
                pl.BlockSpec((num_crops * feat, n_cls), lambda b: (0, 0)),
                pl.BlockSpec((1, n_cls), lambda b: (0, 0)),
            ],
            out_specs=pl.BlockSpec((1, p_blk, n_cls), lambda b: (b, 0, 0)),
        ),
        compiler_params=pltpu.CompilerParams(
            dimension_semantics=("parallel",),
            vmem_limit_bytes=32 * 1024 * 1024),
        cost_estimate=pl.CostEstimate(
            flops=flops, transcendentals=0, bytes_accessed=bytes_accessed),
    )(x_col, conv_w, conv_b, pool_mat, rep_mat, cmask, ssum, fc_w, fc_b)

    return [y.reshape(batch, n_cls)]


# ----------------------------------------------------------------------------
# Deterministic synthetic parameters (no checkpoint load)
# ----------------------------------------------------------------------------

def make_params(key, in_channels, feature_dim, num_crops, num_classes):
    k1, k2, k3 = jax.random.split(key, 3)
    # conv stored [9*C, F]; a PyTorch conv weight [F, C, 3, 3] maps to
    # conv_w[(dy*3+dx)*C + c, f] = weight[f, c, dy, dx].
    conv_w = (jax.random.normal(k1, (9 * in_channels, feature_dim), jnp.float32)
              * (1.0 / jnp.sqrt(9.0 * in_channels))).astype(jnp.bfloat16)
    conv_b = jnp.zeros((1, feature_dim), jnp.float32)
    # fc stored [num_crops*F, n_cls]; PyTorch fc.weight [n_cls, num_crops*F]
    # maps via weight.T (crop-major input features), fc_b = fc.bias.
    fc_in = feature_dim * num_crops
    fc_w = (jax.random.normal(k2, (fc_in, num_classes), jnp.float32)
            * (1.0 / jnp.sqrt(float(fc_in)))).astype(jnp.bfloat16)
    fc_b = jax.random.normal(k3, (1, num_classes), jnp.float32) * 0.01
    return {"conv_w": conv_w, "conv_b": conv_b, "fc_w": fc_w, "fc_b": fc_b}


# ----------------------------------------------------------------------------
# Pure-jnp reference (mirrors the kernel's bf16-on-MXU roundings)
# ----------------------------------------------------------------------------

def _reference_forward(x, params, num_crops):
    n, c_in, h, w = x.shape
    feat = params["conv_b"].shape[-1]
    conv_w = params["conv_w"].astype(jnp.float32).reshape(9, c_in, feat)
    fc_w = params["fc_w"].astype(jnp.float32)
    xb = x.astype(jnp.bfloat16).astype(jnp.float32)
    x_pad = jnp.pad(xb, ((0, 0), (0, 0), (1, 1), (1, 1)))
    out = None
    for dy in range(3):
        for dx in range(3):
            tap = jnp.einsum("nchw,cf->nhwf",
                             x_pad[:, :, dy:dy + h, dx:dx + w],
                             conv_w[dy * 3 + dx])
            out = tap if out is None else out + tap
    out = jnp.maximum(out + params["conv_b"][0], 0.0)
    out = out.astype(jnp.bfloat16).astype(jnp.float32)
    pooled = out.mean(axis=(1, 2))                              # [n, F]
    pooled = pooled.astype(jnp.bfloat16).astype(jnp.float32)
    pooled = pooled.reshape(n // num_crops, num_crops * feat)
    return pooled @ fc_w + params["fc_b"]


if __name__ == "__main__":
    # 2 jigsaw puzzles x 9 crops = 18 images, 3 channels, 8x8 crops.
    batch = 2
    num_crops = 9
    in_channels = 3
    h = w = 8
    feature_dim = 32
    num_classes = 16           # heads[0][1]

    key = jax.random.PRNGKey(0)
    kx, kp = jax.random.split(key)
    x = jax.random.normal(kx, (batch * num_crops, in_channels, h, w),
                          jnp.float32)
    params = make_params(kp, in_channels, feature_dim, num_crops, num_classes)

    out = cfn_net_forward(x, params, num_crops, puzzles_per_block=1)
    y = jax.block_until_ready(out[0])
    assert y.shape == (batch, num_classes), y.shape
    assert bool(jnp.all(jnp.isfinite(y)))

    y_ref = _reference_forward(x, params, num_crops)
    assert bool(jnp.allclose(y, y_ref, rtol=1e-2, atol=1e-2)), (
        float(jnp.max(jnp.abs(y - y_ref))))

    print("KERNEL_OK")
</pallas_src>

<mosaic_0001>
module attributes {stable_mosaic.version = 11 : i64} {
  func.func @_cfn_fused_kernel(%arg0: i32, %arg1: memref<1x576x27xbf16, #tpu.memory_space<vmem>>, %arg2: memref<27x32xbf16, #tpu.memory_space<vmem>>, %arg3: memref<1x32xf32, #tpu.memory_space<vmem>>, %arg4: memref<9x576xbf16, #tpu.memory_space<vmem>>, %arg5: memref<32x288xbf16, #tpu.memory_space<vmem>>, %arg6: memref<9x288xf32, #tpu.memory_space<vmem>>, %arg7: memref<1x9xf32, #tpu.memory_space<vmem>>, %arg8: memref<288x16xbf16, #tpu.memory_space<vmem>>, %arg9: memref<1x16xf32, #tpu.memory_space<vmem>>, %arg10: memref<1x1x16xf32, #tpu.memory_space<vmem>>) attributes {dimension_semantics = [#tpu.dimension_semantics<parallel>], iteration_bounds = array<i64: 2>, scalar_prefetch = 0 : i64, scratch_operands = 0 : i64, tpu.core_type = #tpu.core_type<tc>, window_params = [{transform_indices = @transform_0, window_bounds = array<i64: 1, 576, 27>}, {pipeline_mode = #tpu.pipeline_mode<synchronous>, transform_indices = @transform_1, window_bounds = array<i64: 27, 32>}, {pipeline_mode = #tpu.pipeline_mode<synchronous>, transform_indices = @transform_2, window_bounds = array<i64: 1, 32>}, {pipeline_mode = #tpu.pipeline_mode<synchronous>, transform_indices = @transform_3, window_bounds = array<i64: 9, 576>}, {pipeline_mode = #tpu.pipeline_mode<synchronous>, transform_indices = @transform_4, window_bounds = array<i64: 32, 288>}, {pipeline_mode = #tpu.pipeline_mode<synchronous>, transform_indices = @transform_5, window_bounds = array<i64: 9, 288>}, {pipeline_mode = #tpu.pipeline_mode<synchronous>, transform_indices = @transform_6, window_bounds = array<i64: 1, 9>}, {pipeline_mode = #tpu.pipeline_mode<synchronous>, transform_indices = @transform_7, window_bounds = array<i64: 288, 16>}, {pipeline_mode = #tpu.pipeline_mode<synchronous>, transform_indices = @transform_8, window_bounds = array<i64: 1, 16>}, {transform_indices = @transform_9, window_bounds = array<i64: 1, 1, 16>}]} {
    %c0 = arith.constant 0 : index
    %c0_0 = arith.constant 0 : index
    %c0_1 = arith.constant 0 : index
    %0 = vector.load %arg1[%c0, %c0_0, %c0_1] : memref<1x576x27xbf16, #tpu.memory_space<vmem>>, vector<1x576x27xbf16>
    %1 = vector.shape_cast %0 : vector<1x576x27xbf16> to vector<576x27xbf16>
    %c0_2 = arith.constant 0 : index
    %c0_3 = arith.constant 0 : index
    %2 = vector.load %arg2[%c0_2, %c0_3] : memref<27x32xbf16, #tpu.memory_space<vmem>>, vector<27x32xbf16>
    %cst = arith.constant dense<0.000000e+00> : vector<576x32xf32>
    %3 = tpu.matmul %1, %2, %cst {dimension_numbers = #tpu.dot_dimension_numbers<[1], [0], [0], [1], [0, 0, 1, 1], [], []>} : vector<576x27xbf16>, vector<27x32xbf16>, vector<576x32xf32> -> vector<576x32xf32>
    %c0_4 = arith.constant 0 : index
    %c0_5 = arith.constant 0 : index
    %4 = vector.load %arg3[%c0_4, %c0_5] : memref<1x32xf32, #tpu.memory_space<vmem>>, vector<1x32xf32>
    %5 = vector.broadcast %4 : vector<1x32xf32> to vector<576x32xf32>
    %6 = arith.addf %3, %5 : vector<576x32xf32>
    %cst_6 = arith.constant 0.000000e+00 : f32
    %7 = vector.broadcast %cst_6 : f32 to vector<576x32xf32>
    %8 = arith.maximumf %6, %7 : vector<576x32xf32>
    %c0_7 = arith.constant 0 : index
    %c0_8 = arith.constant 0 : index
    %9 = vector.load %arg4[%c0_7, %c0_8] : memref<9x576xbf16, #tpu.memory_space<vmem>>, vector<9x576xbf16>
    %10 = arith.truncf %8 : vector<576x32xf32> to vector<576x32xbf16>
    %cst_9 = arith.constant dense<0.000000e+00> : vector<9x32xf32>
    %11 = tpu.matmul %9, %10, %cst_9 {dimension_numbers = #tpu.dot_dimension_numbers<[1], [0], [0], [1], [0, 0, 1, 1], [], []>} : vector<9x576xbf16>, vector<576x32xbf16>, vector<9x32xf32> -> vector<9x32xf32>
    %12 = arith.truncf %11 : vector<9x32xf32> to vector<9x32xbf16>
    %c0_10 = arith.constant 0 : index
    %c0_11 = arith.constant 0 : index
    %13 = vector.load %arg5[%c0_10, %c0_11] : memref<32x288xbf16, #tpu.memory_space<vmem>>, vector<32x288xbf16>
    %cst_12 = arith.constant dense<0.000000e+00> : vector<9x288xf32>
    %14 = tpu.matmul %12, %13, %cst_12 {dimension_numbers = #tpu.dot_dimension_numbers<[1], [0], [0], [1], [0, 0, 1, 1], [], []>} : vector<9x32xbf16>, vector<32x288xbf16>, vector<9x288xf32> -> vector<9x288xf32>
    %c0_13 = arith.constant 0 : index
    %c0_14 = arith.constant 0 : index
    %15 = vector.load %arg6[%c0_13, %c0_14] : memref<9x288xf32, #tpu.memory_space<vmem>>, vector<9x288xf32>
    %16 = arith.mulf %14, %15 : vector<9x288xf32>
    %17 = arith.truncf %16 : vector<9x288xf32> to vector<9x288xbf16>
    %c0_15 = arith.constant 0 : index
    %c0_16 = arith.constant 0 : index
    %18 = vector.load %arg8[%c0_15, %c0_16] : memref<288x16xbf16, #tpu.memory_space<vmem>>, vector<288x16xbf16>
    %cst_17 = arith.constant dense<0.000000e+00> : vector<9x16xf32>
    %19 = tpu.matmul %17, %18, %cst_17 {dimension_numbers = #tpu.dot_dimension_numbers<[1], [0], [0], [1], [0, 0, 1, 1], [], []>} : vector<9x288xbf16>, vector<288x16xbf16>, vector<9x16xf32> -> vector<9x16xf32>
    %c0_18 = arith.constant 0 : index
    %c0_19 = arith.constant 0 : index
    %20 = vector.load %arg7[%c0_18, %c0_19] : memref<1x9xf32, #tpu.memory_space<vmem>>, vector<1x9xf32>
    %cst_20 = arith.constant dense<0.000000e+00> : vector<1x16xf32>
    %21 = tpu.matmul %20, %19, %cst_20 {dimension_numbers = #tpu.dot_dimension_numbers<[1], [0], [0], [1], [0, 0, 1, 1], [], []>} : vector<1x9xf32>, vector<9x16xf32>, vector<1x16xf32> -> vector<1x16xf32>
    %c0_21 = arith.constant 0 : index
    %c0_22 = arith.constant 0 : index
    %22 = vector.load %arg9[%c0_21, %c0_22] : memref<1x16xf32, #tpu.memory_space<vmem>>, vector<1x16xf32>
    %23 = arith.addf %21, %22 : vector<1x16xf32>
    %c0_23 = arith.constant 0 : index
    %c0_24 = arith.constant 0 : index
    %c0_25 = arith.constant 0 : index
    %24 = vector.load %arg10[%c0_23, %c0_24, %c0_25] : memref<1x1x16xf32, #tpu.memory_space<vmem>>, vector<1x1x16xf32>
    %25 = vector.shape_cast %24 : vector<1x1x16xf32> to vector<1x16xf32>
    %26 = vector.shape_cast %23 : vector<1x16xf32> to vector<1x1x16xf32>
    tpu.vector_store %arg10[%c0_23, %c0_24, %c0_25], %26 {strides = array<i32>} : memref<1x1x16xf32, #tpu.memory_space<vmem>>, vector<1x1x16xf32>,
    return
  }
  func.func @transform_0(%arg0: i32) -> (i32, i32, i32) {
    %c0_i32 = arith.constant 0 : i32
    %c0_i32_0 = arith.constant 0 : i32
    %c0_i32_1 = arith.constant 0 : i32
    return %arg0, %c0_i32, %c0_i32_0 : i32, i32, i32
  }
  func.func @transform_1(%arg0: i32) -> (i32, i32) {
    %c0_i32 = arith.constant 0 : i32
    %c0_i32_0 = arith.constant 0 : i32
    %c0_i32_1 = arith.constant 0 : i32
    return %c0_i32, %c0_i32_0 : i32, i32
  }
  func.func @transform_2(%arg0: i32) -> (i32, i32) {
    %c0_i32 = arith.constant 0 : i32
    %c0_i32_0 = arith.constant 0 : i32
    %c0_i32_1 = arith.constant 0 : i32
    return %c0_i32, %c0_i32_0 : i32, i32
  }
  func.func @transform_3(%arg0: i32) -> (i32, i32) {
    %c0_i32 = arith.constant 0 : i32
    %c0_i32_0 = arith.constant 0 : i32
    %c0_i32_1 = arith.constant 0 : i32
    return %c0_i32, %c0_i32_0 : i32, i32
  }
  func.func @transform_4(%arg0: i32) -> (i32, i32) {
    %c0_i32 = arith.constant 0 : i32
    %c0_i32_0 = arith.constant 0 : i32
    %c0_i32_1 = arith.constant 0 : i32
    return %c0_i32, %c0_i32_0 : i32, i32
  }
  func.func @transform_5(%arg0: i32) -> (i32, i32) {
    %c0_i32 = arith.constant 0 : i32
    %c0_i32_0 = arith.constant 0 : i32
    %c0_i32_1 = arith.constant 0 : i32
    return %c0_i32, %c0_i32_0 : i32, i32
  }
  func.func @transform_6(%arg0: i32) -> (i32, i32) {
    %c0_i32 = arith.constant 0 : i32
    %c0_i32_0 = arith.constant 0 : i32
    %c0_i32_1 = arith.constant 0 : i32
    return %c0_i32, %c0_i32_0 : i32, i32
  }
  func.func @transform_7(%arg0: i32) -> (i32, i32) {
    %c0_i32 = arith.constant 0 : i32
    %c0_i32_0 = arith.constant 0 : i32
    %c0_i32_1 = arith.constant 0 : i32
    return %c0_i32, %c0_i32_0 : i32, i32
  }
  func.func @transform_8(%arg0: i32) -> (i32, i32) {
    %c0_i32 = arith.constant 0 : i32
    %c0_i32_0 = arith.constant 0 : i32
    %c0_i32_1 = arith.constant 0 : i32
    return %c0_i32, %c0_i32_0 : i32, i32
  }
  func.func @transform_9(%arg0: i32) -> (i32, i32, i32) {
    %c0_i32 = arith.constant 0 : i32
    %c0_i32_0 = arith.constant 0 : i32
    %c0_i32_1 = arith.constant 0 : i32
    return %arg0, %c0_i32, %c0_i32_0 : i32, i32, i32
  }
}

</mosaic_0001>

<bundles_post_ra>
// kernel: cfn_net_forward.1
= control target key start
LH: loop header
LB: loop body
LE: loop exit
PB: predicated region body
PF: predicated region fallthrough
CT: control target
= control target key end

     0   :  { %14 = vsyncpa [#allocation3], 0  ;;  %s2867_s0 = inlined_call_operand.vmem [shape: bf16[2,576,27], index: 0, kind: input, shape index: {}]   ;;  %s2868_s1 = inlined_call_operand.vmem [shape: bf16[27,32], index: 1, kind: input, shape index: {}]   ;;  %s2869_s2 = inlined_call_operand.vmem [shape: f32[1,32], index: 2, kind: input, shape index: {}]   ;;  %s2870_s3 = inlined_call_operand.vmem [shape: bf16[9,576], index: 3, kind: input, shape index: {}]   ;;  %s2871_s4 = inlined_call_operand.vmem [shape: bf16[32,288], index: 4, kind: input, shape index: {}]   ;;  %s2872_s5 = inlined_call_operand.vmem [shape: f32[9,288], index: 5, kind: input, shape index: {}]   ;;  %s2873_s6 = inlined_call_operand.vmem [shape: f32[1,9], index: 6, kind: input, shape index: {}]   ;;  %s2874_s7 = inlined_call_operand.vmem [shape: bf16[288,16], index: 7, kind: input, shape index: {}]   ;;  %s2875_s8 = inlined_call_operand.vmem [shape: f32[1,16], index: 8, kind: input, shape index: {}]   ;;  %s2876_s9 = inlined_call_operand.hbm [shape: f32[2,1,16], index: 9, kind: output, shape index: {}]  }
   0x1   :  { %16 = vsyncpa [#allocation3 + $0x1], 0  ;;  %s2410_s30 = smov 0   ;;  %s2412_s10 = smov 0  }
   0x2   :  { %s2414_s11 = smov 0   ;;  %s2416_s12 = smov 0  }
   0x3 LB: > { %s2431_s13 = sadd.s32 4294967295, %s2353_s12   ;;  %s1831_s14 = sadd.s32 4294967294, %s2353_s12   ;;  %s2353_s12 = sphi %s2416_s12, %s2882_s12   ;;  %s2349_s11 = sphi %s2414_s11, %s2881_s11   ;;  %s2345_s10 = sphi %s2412_s10, %s2880_s10   ;;  %s2341_s30 = sphi %s2410_s30, %s2879_s30  }
   0x4   : > { %s2435_s15 = sadd.s32 1, %s2353_s12   ;;  %s223_s16 = sadd.s32 1, %s2349_s11 }
   0x5   : > { %s220_s17 = ssub.s32 %s2353_s12, %s2435_s15  ;;  %p233_p0 = scmp.ne.s32.totalorder %s2349_s11, %s2345_s10 }
   0x6   : > { %p221_p1 = scmp.eq.s32.totalorder %s220_s17, 0  ;;  %p234_p2 = scmp.eq.s32.totalorder %s2431_s13, 1 }
   0x7   : > { %p239_p3 = scmp.ne.s32.totalorder %s2345_s10, %s2341_s30  ;;  %p240_p4 = scmp.eq.s32.totalorder %s1831_s14, 1 }
   0x8   : > { %s2446_s18 = scalar_select %p221_p1, %s2349_s11, %s223_s16  }
   0x9   : > { %p2448_p5 = por %p234_p2, %p233_p0  ;;  %p2452_p6 = por %p240_p4, %p239_p3 }
   0xa   : > { %p1834_p7 = scmp.ge.s32.totalorder %s2353_s12, 1  ;;  %p290_p8 = scmp.lt.s32.totalorder %s2353_s12, 3 }
   0xc   : > { %p291_p9 = pnand %p1834_p7, %p290_p8 }
   0xd   : > { %p325_p10 = scmp.lt.s32.totalorder (!%p291_p9), %s2431_s13, 1  ;;  %s323_s17 = sand.u32 (!%p291_p9), 1, %s2345_s10  }
   0xe   : > { %294 = sbr.rel (%p291_p9) target bundleno = 1226 (0x4ca), region = 56  ;;  %s1946_s23 = sshll.u32 (!%p291_p9), %s2431_s13, 4 }
   0xf   : > { %s324_s24 = scalar_lea.vmem (!%p291_p9), [#allocation2], %s323_s17  ;;  %s2832_s28 = scalar_lea.hbm (!%p291_p9), %s2876_s9, %s1946_s23 }
  0x13   : > { %v2222_v0 = vld [vmem:[%s2868_s1 + $0x8] sm:$0x3f]   ;;  %vm714_vm0 = vcmask 1044480   ;;  %vm715_vm1 = vcmask 1045504   ;;  %v2355_v1 = vmov 65535   ;;  %v2223_v3 = vld [vmem:[%s2868_s1] sm:$0xff]  }
  0x14   : > { %v716_v2 = vsel %vm714_vm0, 4294967295, %v2355_v1  ;;  %s326_s25 = scalar_select %p325_p10, %s2431_s13, 1  ;;  %vm605_vm2 = vcmask 220160   ;;  %v2262_v42 = vld [vmem:[%s2870_s3 + $0x4] ss:$20 sps:$4 sm:$0x1f]  }
  0x15   : > { %v717_v4 = vsel %vm715_vm1, %v716_v2, 0  ;;  %1217 = vmatprep.mubr.bf16.mxu1 %v2262_v42  ;;  %v2549_v44 = vld [vmem:[%s2869_s2] ss:$0 sm:$0xff]  ;;  %vm2357_vm3 = vmmov 0   ;;  %vm1181_vm4 = vcmask 523264   ;;  %vm1349_vm5 = vcmask 261120  }
  0x16   : > { %v719_v5 = vand.u32 %v2222_v0, %v717_v4  ;;  %s2178_s26 = smul.u32 288, %s326_s25  ;;  %vm1687_vm6 = vcmask 1040384   ;;  %vm1683_vm7 = vcmask 72704   ;;  %s1776_s25 = sshll.u32 %s324_s24, 4  ;;  %vm1761_vm8 = vcmask 122880   ;;  %s1777_s25 = int_to_ptr.vmem [resolvable:$true] %s1776_s25 }
  0x17   : > { %s2293_s14 = scalar_lea.vmem %s1777_s25, 16  ;;  %s2359_s13 = smov [#allocation2]  }
  0x18   : > { %2067 = vmatprep.subr.bf16.mxu0 %v719_v5  ;;  %s2469_s29 = scalar_lea.vmem %s2867_s0, %s2178_s26  ;;  %p2294_p11 = scmp.ne.s32.totalorder %s1777_s25, %s2293_s14 }
  0x19   : > { %2068 = vmatpush3.bf16.msra.mxu0 %v719_v5  ;;  %v2224_v6 = vld [vmem:[%s2469_s29] sm:$0xff]   ;;  %v2225_v7 = vld [vmem:[%s2469_s29 + $0x8] sm:$0xff]   ;;  %v2226_v8 = vld [vmem:[%s2469_s29 + $0x10] sm:$0xff]   ;;  %s2297_s16 = sshll.u32 %s2359_s13, 4  ;;  %s2298_s16 = int_to_ptr.vmem [resolvable:$false] %s2297_s16 }
  0x1a   : > { %2069 = vmatprep.subr.bf16.mxu0 %v2223_v3  ;;  %2071 = vmatprep.mubr.msk.bf16.mxu0 %vm605_vm2, %v2224_v6  ;;  %v2227_v9 = vld [vmem:[%s2469_s29 + $0x18] sm:$0xff]   ;;  %v2228_v10 = vld [vmem:[%s2469_s29 + $0x20] sm:$0xff]   ;;  %v2229_v11 = vld [vmem:[%s2469_s29 + $0x28] sm:$0xff]   ;;  %p2295_p12 = pnand %p2294_p11, %p2448_p5  ;;  %s2299_s21 = scalar_lea.vmem %s2298_s16, 32 }
  0x1b   : > { %v2230_v12 = vld [vmem:[%s2469_s29 + $0x30] sm:$0xff]   ;;  %v2231_v13 = vld [vmem:[%s2469_s29 + $0x38] sm:$0xff]   ;;  %v2232_v14 = vld [vmem:[%s2469_s29 + $0x40] sm:$0xff]   ;;  %p2300_p0 = scmp.lt.s32.totalorder %s1777_s25, %s2298_s16  ;;  %p2301_p1 = scmp.lt.s32.totalorder %s2299_s21, %s2293_s14 }
  0x1c   : > { %v2233_v15 = vld [vmem:[%s2469_s29 + $0x48] sm:$0xff]   ;;  %v2234_v16 = vld [vmem:[%s2469_s29 + $0x50] sm:$0xff]   ;;  %v2235_v17 = vld [vmem:[%s2469_s29 + $0x58] sm:$0xff]   ;;  %p2296_p13 = pneg %p2295_p12 }
  0x1d   : > { %2070 = vmatpush3.bf16.msra.mxu0 %v2223_v3  ;;  %v2236_v18 = vld [vmem:[%s2469_s29 + $0x60] sm:$0xff]   ;;  %v2237_v19 = vld [vmem:[%s2469_s29 + $0x68] sm:$0xff]   ;;  %v2238_v20 = vld [vmem:[%s2469_s29 + $0x70] sm:$0xff]   ;;  %p2302_p2 = por %p2301_p1, %p2300_p0 }
  0x1e   : > { %v2239_v21 = vld [vmem:[%s2469_s29 + $0x78] sm:$0xff]   ;;  %v2240_v22 = vld [vmem:[%s2469_s29 + $0x80] sm:$0xff]   ;;  %v2241_v23 = vld [vmem:[%s2469_s29 + $0x88] sm:$0xff]  }
  0x1f   : > { %v2242_v24 = vld [vmem:[%s2469_s29 + $0x90] sm:$0xff]   ;;  %v2243_v25 = vld [vmem:[%s2469_s29 + $0x98] sm:$0xff]   ;;  %v2244_v26 = vld [vmem:[%s2469_s29 + $0xa0] sm:$0xff]   ;;  %p2303_p3 = pnand %p2302_p2, %p2296_p13 }
  0x20   : > { %2072 = vmatmul.mubr.msk.bf16.vlgmr.msra.gmra.mxu0 %vm605_vm2, %v2225_v7  ;;  %v2245_v27 = vld [vmem:[%s2469_s29 + $0xa8] sm:$0xff]   ;;  %v2246_v28 = vld [vmem:[%s2469_s29 + $0xb0] sm:$0xff]   ;;  %v2247_v29 = vld [vmem:[%s2469_s29 + $0xb8] sm:$0xff]  }
  0x21   : > { %2075 = vmatprep.mubr.msk.bf16.mxu0 %vm605_vm2, %v2226_v8  ;;  %v2248_v30 = vld [vmem:[%s2469_s29 + $0xc0] sm:$0xff]   ;;  %v2249_v31 = vld [vmem:[%s2469_s29 + $0xc8] sm:$0xff]   ;;  %v2250_v32 = vld [vmem:[%s2469_s29 + $0xd0] sm:$0xff]  }
  0x22   : > { %v2251_v33 = vld [vmem:[%s2469_s29 + $0xd8] sm:$0xff]   ;;  %v2252_v34 = vld [vmem:[%s2469_s29 + $0xe0] sm:$0xff]   ;;  %v2253_v35 = vld [vmem:[%s2469_s29 + $0xe8] sm:$0xff]  }
  0x23   : > { %v2254_v36 = vld [vmem:[%s2469_s29 + $0xf0] sm:$0xff]   ;;  %v2255_v37 = vld [vmem:[%s2469_s29 + $0xf8] sm:$0xff]   ;;  %v2256_v38 = vld [vmem:[%s2469_s29 + $0x100] sm:$0xff]  }
  0x24   : > { %v2257_v39 = vld [vmem:[%s2469_s29 + $0x108] sm:$0xff]   ;;  %v2258_v40 = vld [vmem:[%s2469_s29 + $0x110] sm:$0xff]   ;;  %v2259_v41 = vld [vmem:[%s2469_s29 + $0x118] sm:$0xff]   ;;  %s1764_s29 = scalar_lea.sflag [#allocation3], %s323_s17 }
  0x28   : > { %2076 = vmatmul.mubr.msk.bf16.gmra.mxu0 %vm605_vm2, %v2227_v9 }
  0x29   : > { %2079 = vmatprep.mubr.msk.bf16.mxu0 %vm605_vm2, %v2228_v10 }
  0x30   : > { %2080 = vmatmul.mubr.msk.bf16.gmra.mxu0 %vm605_vm2, %v2229_v11 }
  0x31   : > { %2083 = vmatprep.mubr.msk.bf16.mxu0 %vm605_vm2, %v2230_v12 }
  0x38   : > { %2084 = vmatmul.mubr.msk.bf16.gmra.mxu0 %vm605_vm2, %v2231_v13 }
  0x39   : > { %2087 = vmatprep.mubr.msk.bf16.mxu0 %vm605_vm2, %v2232_v14 }
  0x40   : > { %2088 = vmatmul.mubr.msk.bf16.gmra.mxu0 %vm605_vm2, %v2233_v15 }
  0x41   : > { %2091 = vmatprep.mubr.msk.bf16.mxu0 %vm605_vm2, %v2234_v16 }
  0x48   : > { %2092 = vmatmul.mubr.msk.bf16.gmra.mxu0 %vm605_vm2, %v2235_v17 }
  0x49   : > { %2095 = vmatprep.mubr.msk.bf16.mxu0 %vm605_vm2, %v2236_v18 }
  0x50   : > { %2096 = vmatmul.mubr.msk.bf16.gmra.mxu0 %vm605_vm2, %v2237_v19 }
  0x51   : > { %2099 = vmatprep.mubr.msk.bf16.mxu0 %vm605_vm2, %v2238_v20 }
  0x58   : > { %2100 = vmatmul.mubr.msk.bf16.gmra.mxu0 %vm605_vm2, %v2239_v21 }
  0x59   : > { %2103 = vmatprep.mubr.msk.bf16.mxu0 %vm605_vm2, %v2240_v22 }
  0x60   : > { %2104 = vmatmul.mubr.msk.bf16.gmra.mxu0 %vm605_vm2, %v2241_v23 }
  0x61   : > { %2107 = vmatprep.mubr.msk.bf16.mxu0 %vm605_vm2, %v2242_v24 }
  0x68   : > { %2108 = vmatmul.mubr.msk.bf16.gmra.mxu0 %vm605_vm2, %v2243_v25 }
  0x69   : > { %2111 = vmatprep.mubr.msk.bf16.mxu0 %vm605_vm2, %v2244_v26 }
  0x70   : > { %2112 = vmatmul.mubr.msk.bf16.gmra.mxu0 %vm605_vm2, %v2245_v27 }
  0x71   : > { %2115 = vmatprep.mubr.msk.bf16.mxu0 %vm605_vm2, %v2246_v28 }
  0x78   : > { %2116 = vmatmul.mubr.msk.bf16.gmra.mxu0 %vm605_vm2, %v2247_v29 }
  0x79   : > { %2119 = vmatprep.mubr.msk.bf16.mxu0 %vm605_vm2, %v2248_v30 }
  0x80   : > { %2120 = vmatmul.mubr.msk.bf16.gmra.mxu0 %vm605_vm2, %v2249_v31 }
  0x81   : > { %2123 = vmatprep.mubr.msk.bf16.mxu0 %vm605_vm2, %v2250_v32 }
  0x88   : > { %2124 = vmatmul.mubr.msk.bf16.gmra.mxu0 %vm605_vm2, %v2251_v33 }
  0x89   : > { %2127 = vmatprep.mubr.msk.bf16.mxu0 %vm605_vm2, %v2252_v34 }
  0x90   : > { %2128 = vmatmul.mubr.msk.bf16.gmra.mxu0 %vm605_vm2, %v2253_v35 }
  0x91   : > { %2131 = vmatprep.mubr.msk.bf16.mxu0 %vm605_vm2, %v2254_v36 }
  0x98   : > { %2132 = vmatmul.mubr.msk.bf16.gmra.mxu0 %vm605_vm2, %v2255_v37 }
  0x99   : > { %2135 = vmatprep.mubr.msk.bf16.mxu0 %vm605_vm2, %v2256_v38 }
  0xa0   : > { %2136 = vmatmul.mubr.msk.bf16.gmra.mxu0 %vm605_vm2, %v2257_v39 }
  0xa1   : > { %2139 = vmatprep.mubr.msk.bf16.mxu0 %vm605_vm2, %v2258_v40 }
  0xa8   : > { %2140 = vmatmul.mubr.msk.bf16.gmra.mxu0 %vm605_vm2, %v2259_v41 }
  0xe0   : > { %v2073_v43 = vpop.f32.mrf.mxu0 }
  0xe1   : > { %v764_v46 = vadd.f32 %v2073_v43, %v2549_v44 }
  0xe2   : > { %v755_v45 = vpop.f32.mrf.mxu0 }
  0xe3   : > { %v756_v48 = vadd.f32 %v2549_v44, %v755_v45  ;;  %v1044_v51 = vmax.f32 %v764_v46, 0.0 }
  0xe4   : > { %v2074_v47 = vpop.f32.mrf.mxu0 }
  0xe5   : > { %v767_v49 = vadd.f32 %v2074_v47, %v2549_v44  ;;  %v1042_v55 = vmax.f32 %v756_v48, 0.0 }
  0xe6   : > { %v758_v50 = vpop.f32.mrf.mxu0 }
  0xe7   : > { %v1045_v52 = vmax.f32 %v767_v49, 0.0  ;;  %v759_v53 = vadd.f32 %v2549_v44, %v758_v50 }
  0xe8   : > { %v2077_v54 = vpop.f32.mrf.mxu0 }
  0xe9   : > { %v2555_v56 = vpack.c.bf16 %v1045_v52, %v1044_v51  ;;  %v1043_v57 = vmax.f32 %v759_v53, 0.0  ;;  %v780_v60 = vadd.f32 %v2077_v54, %v2549_v44 }
  0xea   : > { %v771_v58 = vpop.f32.mrf.mxu0 }
  0xeb   : > { %v2557_v59 = vpack.c.bf16 %v1043_v57, %v1042_v55  ;;  %v772_v62 = vadd.f32 %v2549_v44, %v771_v58  ;;  %v1048_v1 = vmax.f32 %v780_v60, 0.0 }
  0xec   : > { %v2078_v61 = vpop.f32.mrf.mxu0 }
  0xed   : > { %v783_v63 = vadd.f32 %v2078_v61, %v2549_v44  ;;  %v1046_v5 = vmax.f32 %v772_v62, 0.0 }
  0xee   : > { %v774_v0 = vpop.f32.mrf.mxu0 }
  0xef   : > { %v1049_v2 = vmax.f32 %v783_v63, 0.0  ;;  %v775_v3 = vadd.f32 %v2549_v44, %v774_v0 }
  0xf0   : > { %v2081_v4 = vpop.f32.mrf.mxu0 }
  0xf1   : > { %v2563_v6 = vpack.c.bf16 %v1049_v2, %v1048_v1  ;;  %v1047_v7 = vmax.f32 %v775_v3, 0.0  ;;  %v796_v61 = vadd.f32 %v2081_v4, %v2549_v44 }
  0xf2   : > { %v2565_v8 = vpop.f32.mrf.mxu0 }
  0xf3   : > { %v2567_v9 = vpack.c.bf16 %v1047_v7, %v1046_v5 }
  0xf4   : > { %v2082_v10 = vpop.f32.mrf.mxu0 }
  0xf5   : > { %v799_v48 = vadd.f32 %v2082_v10, %v2549_v44 }
  0xf6   : > { %v790_v11 = vpop.f32.mrf.mxu0 }
  0xf7   : > { %v1053_v1 = vmax.f32 %v799_v48, 0.0  ;;  %v791_v7 = vadd.f32 %v2549_v44, %v790_v11 }
  0xf8   : > { %v2085_v12 = vpop.f32.mrf.mxu0 }
  0xf9   : > { %v812_v32 = vadd.f32 %v2085_v12, %v2549_v44 }
  0xfa   : > { %v803_v13 = vpop.f32.mrf.mxu0 }
  0xfb   : > { %v1056_v43 = vmax.f32 %v812_v32, 0.0  ;;  %v804_v45 = vadd.f32 %v2549_v44, %v803_v13 }
  0xfc   : > { %v2086_v14 = vpop.f32.mrf.mxu0 }
  0xfd   : > { %v815_v29 = vadd.f32 %v2086_v14, %v2549_v44  ;;  %v1054_v62 = vmax.f32 %v804_v45, 0.0 }
  0xfe   : > { %v806_v15 = vpop.f32.mrf.mxu0 }
  0xff   : > { %v1057_v36 = vmax.f32 %v815_v29, 0.0  ;;  %v807_v37 = vadd.f32 %v2549_v44, %v806_v15 }
 0x100   : > { %v2569_v16 = vpop.f32.mrf.mxu0 }
 0x101   : > { %v1055_v52 = vmax.f32 %v807_v37, 0.0  ;;  %v1127_v55 = vpack.c.bf16 %v1057_v36, %v1056_v43 }
 0x102   : > { %v2571_v17 = vpop.f32.mrf.mxu0 }
 0x103   : > { %v1126_v10 = vpack.c.bf16 %v1055_v52, %v1054_v62  ;;  %v828_v52 = vadd.f32 %v2569_v16, %v2549_v44 }
 0x104   : > { %v2573_v18 = vpop.f32.mrf.mxu0 }
 0x105   : > { %v1060_v16 = vmax.f32 %v828_v52, 0.0 }
 0x106   : > { %v2575_v19 = vpop.f32.mrf.mxu0 }
 0x108   : > { %v2093_v20 = vpop.f32.mrf.mxu0 }
 0x10a   : > { %v2577_v21 = vpop.f32.mrf.mxu0 }
 0x10c   : > { %v2094_v22 = vpop.f32.mrf.mxu0 }
 0x10d   : > { %v847_v12 = vadd.f32 %v2094_v22, %v2549_v44 }
 0x10e   : > { %v2579_v23 = vpop.f32.mrf.mxu0 }
 0x10f   : > { %v839_v36 = vadd.f32 %v2549_v44, %v2579_v23  ;;  %v831_v23 = vadd.f32 %v2573_v18, %v2549_v44 }
 0x110   : > { %v2097_v24 = vpop.f32.mrf.mxu0 }
 0x111   : > { %v860_v46 = vadd.f32 %v2097_v24, %v2549_v44  ;;  %v1063_v48 = vmax.f32 %v839_v36, 0.0 }
 0x112   : > { %v851_v25 = vpop.f32.mrf.mxu0 }
 0x113   : > { %v1068_v63 = vmax.f32 %v860_v46, 0.0  ;;  %v852_v2 = vadd.f32 %v2549_v44, %v851_v25  ;;  %v788_v25 = vadd.f32 %v2549_v44, %v2565_v8 }
 0x114   : > { %v2098_v26 = vpop.f32.mrf.mxu0 }
 0x115   : > { %v863_v38 = vadd.f32 %v2098_v26, %v2549_v44 }
 0x116   : > { %v854_v27 = vpop.f32.mrf.mxu0 }
 0x117   : > { %v1069_v53 = vmax.f32 %v863_v38, 0.0  ;;  %v855_v57 = vadd.f32 %v2549_v44, %v854_v27  ;;  %v1052_v27 = vmax.f32 %v796_v61, 0.0 }
 0x118   : > { %v2101_v28 = vpop.f32.mrf.mxu0 }
 0x119   : > { %v876_v31 = vadd.f32 %v2101_v28, %v2549_v44  ;;  %v1133_v13 = vpack.c.bf16 %v1069_v53, %v1068_v63  ;;  %v1067_v4 = vmax.f32 %v855_v57, 0.0  ;;  %v844_v28 = vadd.f32 %v2093_v20, %v2549_v44 }
 0x11a   : > { %v867_v30 = vpop.f32.mrf.mxu0  ;;  %v1125_v32 = vpack.c.bf16 %v1053_v1, %v1052_v27  ;;  %v1050_v20 = vmax.f32 %v788_v25, 0.0 }
 0x11b   : > { %v868_v34 = vadd.f32 %v2549_v44, %v867_v30  ;;  %v1072_v40 = vmax.f32 %v876_v31, 0.0  ;;  %v1066_v30 = vmax.f32 %v852_v2, 0.0 }
 0x11c   : > { %v2102_v33 = vpop.f32.mrf.mxu0 }
 0x11d   : > { %v879_v35 = vadd.f32 %v2102_v33, %v2549_v44  ;;  %v1070_v49 = vmax.f32 %v868_v34, 0.0  ;;  %v1051_v33 = vmax.f32 %v791_v7, 0.0  ;;  %v1065_v34 = vmax.f32 %v847_v12, 0.0 }
 0x11e   : > { %v870_v39 = vpop.f32.mrf.mxu0  ;;  %v1132_v37 = vpack.c.bf16 %v1067_v4, %v1066_v30 }
 0x11f   : > { %v1073_v41 = vmax.f32 %v879_v35, 0.0  ;;  %v871_v42 = vadd.f32 %v2549_v44, %v870_v39  ;;  %v1064_v39 = vmax.f32 %v844_v28, 0.0  ;;  %v1124_v45 = vpack.c.bf16 %v1051_v33, %v1050_v20 }
 0x120   : > { %v2105_v47 = vpop.f32.mrf.mxu0 }
 0x121   : > { %v1071_v50 = vmax.f32 %v871_v42, 0.0  ;;  %v1135_v51 = vpack.c.bf16 %v1073_v41, %v1072_v40  ;;  %v892_v60 = vadd.f32 %v2105_v47, %v2549_v44  ;;  %v836_v41 = vadd.f32 %v2549_v44, %v2577_v21 }
 0x122   : > { %v883_v54 = vpop.f32.mrf.mxu0  ;;  %v1131_v46 = vpack.c.bf16 %v1065_v34, %v1064_v39 }
 0x123   : > { %v1134_v58 = vpack.c.bf16 %v1071_v50, %v1070_v49  ;;  %1987 = vmatprep.subr.bf16.mxu1 %v1135_v51  ;;  %v884_v3 = vadd.f32 %v2549_v44, %v883_v54  ;;  %v1076_v15 = vmax.f32 %v892_v60, 0.0  ;;  %v1062_v53 = vmax.f32 %v836_v41, 0.0 }
 0x124   : > { %v2106_v0 = vpop.f32.mrf.mxu0  ;;  %1988 = vmatpush3.bf16.msra.mxu1 %v1127_v55  ;;  %v823_v60 = vadd.f32 %v2549_v44, %v2575_v19 }
 0x125   : > { %v895_v5 = vadd.f32 %v2106_v0, %v2549_v44  ;;  %1989 = vmatprep.subr.bf16.mxu1 %v1134_v58  ;;  %v1074_v11 = vmax.f32 %v884_v3, 0.0  ;;  %v1061_v58 = vmax.f32 %v831_v23, 0.0  ;;  %v1130_v61 = vpack.c.bf16 %v1063_v48, %v1062_v53 }
 0x126   : > { %v886_v14 = vpop.f32.mrf.mxu0  ;;  %v820_v0 = vadd.f32 %v2549_v44, %v2571_v17  ;;  %v1059_v3 = vmax.f32 %v823_v60, 0.0  ;;  %v2260_v17 = vld [vmem:[%s2870_s3] ss:$20 sps:$4 sm:$0x1f]  }
 0x127   : > { %v1077_v24 = vmax.f32 %v895_v5, 0.0  ;;  %v887_v26 = vadd.f32 %v2549_v44, %v886_v14  ;;  %v1129_v2 = vpack.c.bf16 %v1061_v58, %v1060_v16 }
 0x128   : > { %v2109_v29 = vpop.f32.mrf.mxu0  ;;  %1990 = vmatpush3.bf16.msra.mxu1 %v1126_v10  ;;  %v1058_v7 = vmax.f32 %v820_v0, 0.0 }
 0x129   : > { %v2604_v31 = vpack.c.bf16 %v1077_v24, %v1076_v15  ;;  %v1075_v22 = vmax.f32 %v887_v26, 0.0  ;;  %1991 = vmatprep.subr.bf16.mxu1 %v1133_v13  ;;  %v908_v8 = vadd.f32 %v2109_v29, %v2549_v44 }
 0x12a   : > { %v899_v35 = vpop.f32.mrf.mxu0  ;;  %v1128_v10 = vpack.c.bf16 %v1059_v3, %v1058_v7 }
 0x12b   : > { %v2608_v38 = vpack.c.bf16 %v1075_v22, %v1074_v11  ;;  %v900_v42 = vadd.f32 %v2549_v44, %v899_v35  ;;  %v1080_v49 = vmax.f32 %v908_v8, 0.0 }
 0x12c   : > { %v2110_v40 = vpop.f32.mrf.mxu0  ;;  %1992 = vmatpush3.bf16.msra.mxu1 %v1125_v32 }
 0x12d   : > { %v911_v43 = vadd.f32 %v2110_v40, %v2549_v44  ;;  %1993 = vmatprep.subr.bf16.mxu1 %v1132_v37  ;;  %v1078_v54 = vmax.f32 %v900_v42, 0.0 }
 0x12e   : > { %v902_v47 = vpop.f32.mrf.mxu0 }
 0x12f   : > { %v1081_v50 = vmax.f32 %v911_v43, 0.0  ;;  %v903_v51 = vadd.f32 %v2549_v44, %v902_v47 }
 0x130   : > { %v2620_v21 = vpop.f32.mrf.mxu0  ;;  %1994 = vmatpush3.bf16.msra.mxu1 %v1124_v45 }
 0x131   : > { %v2622_v55 = vpack.c.bf16 %v1081_v50, %v1080_v49  ;;  %v1079_v57 = vmax.f32 %v903_v51, 0.0  ;;  %1995 = vmatprep.subr.bf16.mxu1 %v1131_v46  ;;  %v924_v60 = vadd.f32 %v2620_v21, %v2549_v44 }
 0x132   : > { %v2624_v18 = vpop.f32.mrf.mxu0 }
 0x133   : > { %v2628_v62 = vpack.c.bf16 %v1079_v57, %v1078_v54  ;;  %v916_v21 = vadd.f32 %v2549_v44, %v2624_v18 }
 0x134   : > { %v2114_v63 = vpop.f32.mrf.mxu0  ;;  %1996 = vmatpush3.bf16.msra.mxu1 %v2563_v6 }
 0x135   : > { %1997 = vmatprep.subr.bf16.mxu1 %v1130_v61  ;;  %v927_v50 = vadd.f32 %v2114_v63, %v2549_v44 }
 0x136   : > { %v2633_v1 = vpop.f32.mrf.mxu0 }
 0x137   : > { %v919_v63 = vadd.f32 %v2549_v44, %v2633_v1 }
 0x138   : > { %v2117_v5 = vpop.f32.mrf.mxu0  ;;  %1998 = vmatpush3.bf16.msra.mxu1 %v2567_v9  ;;  %v2265_v9 = vld [vmem:[%s2870_s3 + $0xc] ss:$20 sps:$4 sm:$0x1f]  }
 0x139   : > { %1999 = vmatprep.subr.bf16.mxu1 %v1129_v2  ;;  %v940_v33 = vadd.f32 %v2117_v5, %v2549_v44  ;;  %v1085_v2 = vmax.f32 %v927_v50, 0.0 }
 0x13a   : > { %v931_v19 = vpop.f32.mrf.mxu0 }
 0x13b   : > { %v1088_v43 = vmax.f32 %v940_v33, 0.0  ;;  %v932_v45 = vadd.f32 %v2549_v44, %v931_v19 }
 0x13c   : > { %v2118_v12 = vpop.f32.mrf.mxu0  ;;  %2000 = vmatpush3.bf16.msra.mxu1 %v2555_v56 }
 0x13d   : > { %2001 = vmatprep.subr.bf16.mxu1 %v1128_v10  ;;  %v943_v11 = vadd.f32 %v2118_v12, %v2549_v44  ;;  %v1086_v61 = vmax.f32 %v932_v45, 0.0  ;;  %v1084_v12 = vmax.f32 %v924_v60, 0.0 }
 0x13e   : > { %v934_v6 = vpop.f32.mrf.mxu0 }
 0x13f   : > { %v1089_v37 = vmax.f32 %v943_v11, 0.0  ;;  %v935_v8 = vadd.f32 %v2549_v44, %v934_v6 }
 0x140   : > { %v2640_v13 = vpop.f32.mrf.mxu0  ;;  %2002 = vmatpush3.bf16.msra.mxu1 %v2557_v59 }
 0x141   : > { %v1143_v51 = vpack.c.bf16 %v1089_v37, %v1088_v43  ;;  %v1087_v52 = vmax.f32 %v935_v8, 0.0 }
 0x142   : > { %v2646_v14 = vpop.f32.mrf.mxu0 }
 0x143   : > { %1218 = vmatmul.mubr.bf16.vlgmr.msra.gmra.mxu1 %v2260_v17  ;;  %v1142_v3 = vpack.c.bf16 %v1087_v52, %v1086_v61 }
 0x144   : > { %v2648_v4 = vpop.f32.mrf.mxu0  ;;  %1258 = vmatprep.mubr.bf16.mxu1 %v2265_v9  ;;  %v1141_v9 = vpack.c.bf16 %v1085_v2, %v1084_v12  ;;  %v2272_v2 = vld [vmem:[%s2871_s4 + $0x4] ss:$12 sps:$4 sm:$0xff]  }
 0x146   : > { %v2650_v56 = vpop.f32.mrf.mxu0 }
 0x148   : > { %v2125_v15 = vpop.f32.mrf.mxu0 }
 0x149   : > { %v972_v6 = vadd.f32 %v2125_v15, %v2549_v44  ;;  %v959_v15 = vadd.f32 %v2648_v4, %v2549_v44  ;;  %v948_v4 = vadd.f32 %v2549_v44, %v2646_v14 }
 0x14a   : > { %v2652_v24 = vpop.f32.mrf.mxu0 }
 0x14b   : > { %v964_v11 = vadd.f32 %v2549_v44, %v2652_v24 }
 0x14c   : > { %v2126_v26 = vpop.f32.mrf.mxu0 }
 0x14d   : > { %v975_v5 = vadd.f32 %v2126_v26, %v2549_v44  ;;  %v1082_v26 = vmax.f32 %v916_v21, 0.0 }
 0x14e   : > { %v966_v27 = vpop.f32.mrf.mxu0 }
 0x14f   : > { %v967_v1 = vadd.f32 %v2549_v44, %v966_v27  ;;  %v956_v27 = vadd.f32 %v2640_v13, %v2549_v44  ;;  %v1090_v13 = vmax.f32 %v948_v4, 0.0  ;;  %v2281_v4 = vld [vmem:[%s2874_s7 + $0x60] sm:$0xff]  }
 0x150   : > { %v2129_v25 = vpop.f32.mrf.mxu0 }
 0x151   : > { %v988_v46 = vadd.f32 %v2129_v25, %v2549_v44  ;;  %v1083_v25 = vmax.f32 %v919_v63, 0.0  ;;  %v1092_v8 = vmax.f32 %v956_v27, 0.0  ;;  %v2270_v63 = vld [vmem:[%s2871_s4] ss:$12 sps:$4 sm:$0xff]   ;;  %v2274_v27 = vld [vmem:[%s2871_s4 + $0x8] ss:$12 sps:$4 sm:$0xff]  }
 0x152   : > { %v979_v28 = vpop.f32.mrf.mxu0 }
 0x153   : > { %v1100_v16 = vmax.f32 %v988_v46, 0.0  ;;  %v980_v0 = vadd.f32 %v2549_v44, %v979_v28  ;;  %v1097_v28 = vmax.f32 %v975_v5, 0.0  ;;  %v1140_v18 = vpack.c.bf16 %v1083_v25, %v1082_v26 }
 0x154   : > { %v2130_v59 = vpop.f32.mrf.mxu0 }
 0x155   : > { %v991_v39 = vadd.f32 %v2130_v59, %v2549_v44  ;;  %v1098_v17 = vmax.f32 %v980_v0, 0.0  ;;  %v2266_v0 = vld [vmem:[%s2870_s3 + $0x10] ss:$20 sps:$4 sm:$0x1f]  }
 0x156   : > { %v982_v29 = vpop.f32.mrf.mxu0 }
 0x157   : > { %v1101_v53 = vmax.f32 %v991_v39, 0.0  ;;  %v983_v54 = vadd.f32 %v2549_v44, %v982_v29 }
 0x158   : > { %v2133_v30 = vpop.f32.mrf.mxu0 }
 0x159   : > { %v1004_v32 = vadd.f32 %v2133_v30, %v2549_v44  ;;  %v1149_v7 = vpack.c.bf16 %v1101_v53, %v1100_v16  ;;  %v1099_v19 = vmax.f32 %v983_v54, 0.0  ;;  %v1096_v30 = vmax.f32 %v972_v6, 0.0 }
 0x15a   : > { %v995_v22 = vpop.f32.mrf.mxu0 }
 0x15b   : > { %v996_v35 = vadd.f32 %v2549_v44, %v995_v22  ;;  %v1104_v40 = vmax.f32 %v1004_v32, 0.0  ;;  %v1148_v59 = vpack.c.bf16 %v1099_v19, %v1098_v17  ;;  %v1147_v22 = vpack.c.bf16 %v1097_v28, %v1096_v30 }
 0x15c   : > { %v2134_v34 = vpop.f32.mrf.mxu0  ;;  %v1095_v32 = vmax.f32 %v967_v1, 0.0 }
 0x15d   : > { %v1007_v36 = vadd.f32 %v2134_v34, %v2549_v44  ;;  %v1102_v47 = vmax.f32 %v996_v35, 0.0  ;;  %v1094_v34 = vmax.f32 %v964_v11, 0.0  ;;  %v1093_v35 = vmax.f32 %v959_v15, 0.0 }
 0x15e   : > { %v998_v20 = vpop.f32.mrf.mxu0 }
 0x15f   : > { %v1105_v41 = vmax.f32 %v1007_v36, 0.0  ;;  %v999_v42 = vadd.f32 %v2549_v44, %v998_v20  ;;  %v951_v36 = vadd.f32 %v2549_v44, %v2650_v56  ;;  %v1146_v37 = vpack.c.bf16 %v1095_v32, %v1094_v34  ;;  %v2273_v32 = vld [vmem:[%s2871_s4 + $0x20] ss:$12 sps:$4 sm:$0xff]   ;;  %v2275_v34 = vld [vmem:[%s2874_s7 + $0x78] sm:$0xff]  }
 0x160   : > { %v2663_v23 = vpop.f32.mrf.mxu0  ;;  %v1145_v20 = vpack.c.bf16 %v1093_v35, %v1092_v8  ;;  %v2276_v35 = vld [vmem:[%s2874_s7 + $0x38] sm:$0xff]   ;;  %v2280_v8 = vld [vmem:[%s2874_s7 + $0x28] sm:$0xff]  }
 0x161   : > { %v1151_v48 = vpack.c.bf16 %v1105_v41, %v1104_v40  ;;  %v1103_v49 = vmax.f32 %v999_v42, 0.0  ;;  %v1091_v39 = vmax.f32 %v951_v36, 0.0  ;;  %v2277_v36 = vld [vmem:[%s2874_s7 + $0x70] sm:$0xff]  }
 0x162   : > { %v2668_v58 = vpop.f32.mrf.mxu0 }
 0x163   : > { %v1150_v57 = vpack.c.bf16 %v1103_v49, %v1102_v47  ;;  %2009 = vmatprep.subr.bf16.mxu1 %v1151_v48  ;;  %v1144_v42 = vpack.c.bf16 %v1091_v39, %v1090_v13  ;;  %v1020_v47 = vadd.f32 %v2663_v23, %v2549_v44  ;;  %v2356_v48 = vmov 0.0   ;;  %v2283_v39 = vld [vmem:[%s2874_s7 + $0x58] sm:$0xff]   ;;  %v2285_v13 = vld [vmem:[%s2874_s7 + $0x50] sm:$0xff]  }
 0x164   : > { %2010 = vmatpush3.bf16.msra.mxu1 %v1143_v51  ;;  %v2138_v10 = vpop.f32.mrf.mxu0 }
 0x165   : > { %2011 = vmatprep.subr.bf16.mxu1 %v1150_v57  ;;  %v1108_v52 = vmax.f32 %v1020_v47, 0.0 }
 0x166   : > { %v1014_v29 = vpop.f32.mrf.mxu0 }
 0x167   : > { %v1015_v53 = vadd.f32 %v2549_v44, %v1014_v29 }
 0x168   : > { %2012 = vmatpush3.bf16.msra.mxu1 %v1142_v3  ;;  %v2141_v33 = vpop.f32.mrf.mxu0  ;;  %v2358_v3 = vmov 0  }
 0x169   : > { %2013 = vmatprep.subr.bf16.mxu1 %v1149_v7  ;;  %v1036_v41 = vadd.f32 %v2141_v33, %v2549_v44  ;;  %v1107_v61 = vmax.f32 %v1015_v53, 0.0 }
 0x16a   : > { %v1027_v24 = vpop.f32.mrf.mxu0 }
 0x16b   : > { %v1028_v14 = vadd.f32 %v2549_v44, %v1027_v24  ;;  %v2279_v24 = vld [vmem:[%s2874_s7 + $0x68] sm:$0xff]  }
 0x16c   : > { %2014 = vmatpush3.bf16.msra.mxu1 %v1141_v9  ;;  %v2142_v40 = vpop.f32.mrf.mxu0 }
 0x16d   : > { %2015 = vmatprep.subr.bf16.mxu1 %v1148_v59  ;;  %v1039_v56 = vadd.f32 %v2142_v40, %v2549_v44  ;;  %v1110_v49 = vmax.f32 %v1028_v14, 0.0  ;;  %v2284_v40 = vld [vmem:[%s2874_s7 + $0x18] sm:$0xff]  }
 0x16e   : > { %v1030_v43 = vpop.f32.mrf.mxu0 }
 0x16f   : > { %v1113_v45 = vmax.f32 %v1039_v56, 0.0  ;;  %v1031_v46 = vadd.f32 %v2549_v44, %v1030_v43  ;;  %v2287_v56 = vld [vmem:[%s2874_s7 + $0x48] sm:$0xff]   ;;  %v2289_v43 = vld [vmem:[%s2874_s7 + $0x40] sm:$0xff]  }
 0x170   : > { %2016 = vmatpush3.bf16.msra.mxu1 %v1140_v18 }
 0x171   : > { %2017 = vmatprep.subr.bf16.mxu1 %v1147_v22  ;;  %v1111_v51 = vmax.f32 %v1031_v46, 0.0  ;;  %v1440_v46 = vld [vmem:[%s2872_s5 + $0x18] sm:$0x1] }
 0x173   : > { %v1154_v54 = vpack.c.bf16 %v1111_v51, %v1110_v49  ;;  %v1437_v49 = vld [vmem:[%s2872_s5] sm:$0xff] }
 0x174   : > { %2018 = vmatpush3.bf16.msra.mxu1 %v2622_v55  ;;  %v1112_v55 = vmax.f32 %v1036_v41, 0.0  ;;  %v2286_v41 = vld [vmem:[%s2874_s7 + $0x10] sm:$0xff]  }
 0x175   : > { %2019 = vmatprep.subr.bf16.mxu1 %v1146_v37  ;;  %v2278_v37 = vld [vmem:[%s2874_s7 + $0x30] sm:$0xff]  }
 0x176   : > { %v1155_v50 = vpack.c.bf16 %v1113_v45, %v1112_v55  ;;  %v2290_v55 = vld [vmem:[%s2874_s7] sm:$0xff]  }
 0x178   : > { %2020 = vmatpush3.bf16.msra.mxu1 %v2628_v62  ;;  %v2263_v62 = vld [vmem:[%s2870_s3 + $0x8] ss:$20 sps:$4 sm:$0x1f]  }
 0x179   : > { %2021 = vmatprep.subr.bf16.mxu1 %v1145_v20  ;;  %v2282_v20 = vld [vmem:[%s2874_s7 + $0x20] sm:$0xff]  }
 0x17c   : > { %2022 = vmatpush3.bf16.msra.mxu1 %v2604_v31  ;;  %v1023_v31 = vadd.f32 %v2138_v10, %v2549_v44 }
 0x17d   : > { %2023 = vmatprep.subr.bf16.mxu1 %v1144_v42  ;;  %v2288_v42 = vld [vmem:[%s2874_s7 + $0x8] sm:$0xff]  }
 0x17e   : > { %v1109_v23 = vmax.f32 %v1023_v31, 0.0  ;;  %v1441_v31 = vld [vmem:[%s2872_s5 + $0x20] sm:$0x1] }
 0x180   : > { %2024 = vmatpush3.bf16.msra.mxu1 %v2608_v38  ;;  %v1012_v38 = vadd.f32 %v2549_v44, %v2668_v58  ;;  %v1153_v60 = vpack.c.bf16 %v1109_v23, %v1108_v52  ;;  %v2269_v44 = vld [vmem:[%s2871_s4 + $0x1c] ss:$12 sps:$4 sm:$0xff]   ;;  %v2267_v58 = vld [vmem:[%s2871_s4 + $0x18] ss:$12 sps:$4 sm:$0xff]  }
 0x181   : > { %2143 = vmatprep.subr.bf16.mxu1 %v2356_v48 }
 0x182   : > { %v1106_v57 = vmax.f32 %v1012_v38, 0.0 }
 0x183   : > { %1259 = vmatmul.mubr.bf16.vlgmr.msra.gmra.mxu1 %v2263_v62  ;;  %v1438_v62 = vld [vmem:[%s2872_s5 + $0x8] sm:$0xff] }
 0x184   : > { %2144 = vmatpush3.bf16.msra.mxu1 %v1155_v50  ;;  %2151 = vmatprep.mubr.msk.bf16.mxu1 %vm2357_vm3, %v2356_v48  ;;  %v1152_v16 = vpack.c.bf16 %v1107_v61, %v1106_v57  ;;  %v2291_v57 = vld [vmem:[%s2874_s7 + $0x88] sm:$0xff]  }
 0x185   : > { %2145 = vmatprep.subr.bf16.mxu1 %v2356_v48 }
 0x188   : > { %2146 = vmatpush3.bf16.msra.mxu1 %v1154_v54 }
 0x189   : > { %2147 = vmatprep.subr.bf16.mxu1 %v2356_v48 }
 0x18c   : > { %2148 = vmatpush3.bf16.msra.mxu1 %v1153_v60 }
 0x18d   : > { %2149 = vmatprep.subr.bf16.mxu1 %v2356_v48 }
 0x190   : > { %2150 = vmatpush3.bf16.msra.mxu1 %v1152_v16  ;;  %v1442_v16 = vld [vmem:[%s2872_s5 + $0x28] sm:$0x1] }
 0x191   : > { %1365 = vmatprep.subr.bf16.mxu1 %v2269_v44  ;;  %v1439_v44 = vld [vmem:[%s2872_s5 + $0x10] sm:$0xff] }
 0x193   : > { %2152 = vmatmul.mubr.msk.bf16.vlgmr.msra.gmra.mxu1 %vm1181_vm4, %v2266_v0 }
 0x194   : > { %1366 = vmatpush1.bf16.msra.mxu1 %v2267_v58  ;;  %1385 = vmatprep.mubr.bf16.mxu1 %v2358_v3  ;;  %v2292_v58 = vld [vmem:[%s2874_s7 + $0x80] sm:$0xff]  }
 0x195   : > { %1367 = vmatprep.subr.bf16.mxu1 %v2272_v2 }
 0x198   : > { %1368 = vmatpush1.bf16.msra.mxu1 %v2270_v63 }
 0x199   : > { %2155 = vmatprep.subr.bf16.mxu1 %v2356_v48 }
 0x203   : > { %v2003_v5 = vpop.f32.mrf.mxu1 }
 0x205   : > { %v2004_v7 = vpop.f32.mrf.mxu1 }
 0x206   : > { %v2005_v1 = vadd.f32 %v2004_v7, %v2003_v5 }
 0x207   : > { %v2006_v19 = vpop.f32.mrf.mxu1 }
 0x209   : > { %v2007_v10 = vpop.f32.mrf.mxu1 }
 0x20a   : > { %v2008_v59 = vadd.f32 %v2007_v10, %v2006_v19 }
 0x243   : > { %v2025_v12 = vpop.f32.mrf.mxu1 }
 0x245   : > { %v2026_v21 = vpop.f32.mrf.mxu1 }
 0x246   : > { %v2027_v9 = vadd.f32 %v2026_v21, %v2025_v12 }
 0x247   : > { %v2028_v6 = vpop.f32.mrf.mxu1 }
 0x248   : > { %v1261_v26 = vadd.f32 %v2027_v9, %v2005_v1 }
 0x249   : > { %v2029_v17 = vpop.f32.mrf.mxu1 }
 0x24a   : > { %v2030_v25 = vadd.f32 %v2029_v17, %v2028_v6 }
 0x24c   : > { %v1264_v30 = vadd.f32 %v2030_v25, %v2008_v59 }
 0x253   : > { %v1301_v28 = vpop.f32.mrf.mxu1 }
 0x254   : > { %v1302_v18 = vadd.f32 %v1301_v28, %v1261_v26  ;;  %v1682_v26 = vld [vmem:[%s2875_s8] sm:$0x1] }
 0x255   : > { %v2153_v29 = vpop.f32.mrf.mxu1 }
 0x256   : > { %v1681_v29 = vld [vmem:[%s2873_s6] sm:$0x1] }
 0x257   : > { %v1304_v11 = vpop.f32.mrf.mxu1 }
 0x258   : > { %v1305_v15 = vadd.f32 %v1304_v11, %v1264_v30 }
 0x259   : > { %v2154_v22 = vpop.f32.mrf.mxu1 }
 0x25a   : > { %v1308_v33 = vpack.c.bf16 %v1305_v15, %v1302_v18 }
 0x25c   : > { %1923 = vmatmul.mubr.msk.bf16.vlgmr.msra.gmra.mxu1 %vm1349_vm5, %v1308_v33 }
 0x25d   : > { %2156 = vmatpush3.bf16.msra.mxu1 %v2273_v32  ;;  %2159 = vmatprep.mubr.msk.bf16.mxu1 %vm2357_vm3, %v2356_v48 }
 0x25e   : > { %2157 = vmatprep.subr.bf16.mxu1 %v2356_v48 }
 0x261   : > { %2158 = vmatpush3.bf16.msra.mxu1 %v2274_v27 }
 0x262   : > { %2039 = vmatprep.subr.bf16.mxu1 %v2275_v34 }
 0x264   : > { %2160 = vmatmul.mubr.msk.bf16.vlgmr.msra.gmra.mxu1 %vm1349_vm5, %v1308_v33 }
 0x265   : > { %2040 = vmatpush3.bf16.msra.mxu1 %v2276_v35 }
 0x266   : > { %2041 = vmatprep.subr.bf16.mxu1 %v2277_v36 }
 0x269   : > { %2042 = vmatpush3.bf16.msra.mxu1 %v2278_v37 }
 0x26a   : > { %2043 = vmatprep.subr.bf16.mxu1 %v2279_v24 }
 0x26d   : > { %2044 = vmatpush3.bf16.msra.mxu1 %v2280_v8 }
 0x26e   : > { %2045 = vmatprep.subr.bf16.mxu1 %v2281_v4 }
 0x271   : > { %2046 = vmatpush3.bf16.msra.mxu1 %v2282_v20 }
 0x272   : > { %2047 = vmatprep.subr.bf16.mxu1 %v2283_v39 }
 0x275   : > { %2048 = vmatpush3.bf16.msra.mxu1 %v2284_v40 }
 0x276   : > { %2049 = vmatprep.subr.bf16.mxu1 %v2285_v13 }
 0x279   : > { %2050 = vmatpush3.bf16.msra.mxu1 %v2286_v41 }
 0x27a   : > { %2051 = vmatprep.subr.bf16.mxu1 %v2287_v56 }
 0x27d   : > { %2052 = vmatpush3.bf16.msra.mxu1 %v2288_v42 }
 0x27e   : > { %2053 = vmatprep.subr.bf16.mxu1 %v2289_v43 }
 0x281   : > { %2054 = vmatpush3.bf16.msra.mxu1 %v2290_v55 }
 0x282   : > { %2163 = vmatprep.subr.bf16.mxu1 %v2356_v48 }
 0x31c   : > { %v1387_v14 = vpop.f32.mrf.mxu1 }
 0x31d   : > { %v1443_v23 = vmul.f32 %v1437_v49, %v1387_v14 }
 0x31e   : > { %v1389_v45 = vpop.f32.mrf.mxu1 }
 0x31f   : > { %v1444_v52 = vmul.f32 %v1438_v62, %v1389_v45 }
 0x320   : > { %v1391_v47 = vpop.f32.mrf.mxu1 }
 0x321   : > { %v1446_v50 = vmul.f32 %v1440_v46, %v1391_v47 }
 0x322   : > { %v1393_v51 = vpop.f32.mrf.mxu1 }
 0x323   : > { %v1447_v38 = vmul.f32 %v1441_v31, %v1393_v51  ;;  %v1449_v60 = vpack.c.bf16 %v1446_v50, %v1443_v23 }
 0x324   : > { %v1430_v53 = vpop.f32.mrf.mxu1 }
 0x325   : > { %v1450_v54 = vpack.c.bf16 %v1447_v38, %v1444_v52  ;;  %v1445_v3 = vmul.f32 %v1439_v44, %v1430_v53 }
 0x326   : > { %v2161_v61 = vpop.f32.mrf.mxu1 }
 0x327   : > { %1631 = vmatprep.mubr.bf16.mxu1 %v1450_v54 }
 0x328   : > { %v1433_v0 = vpop.f32.mrf.mxu1  ;;  %1632 = vmatmul.mubr.bf16.vlgmr.msra.gmra.mxu1 %v1449_v60 }
 0x329   : > { %2164 = vmatpush3.bf16.msra.mxu1 %v2291_v57  ;;  %2167 = vmatprep.mubr.msk.bf16.mxu1 %vm2357_vm3, %v2356_v48  ;;  %v1448_v2 = vmul.f32 %v1442_v16, %v1433_v0 }
 0x32a   : > { %v2162_v63 = vpop.f32.mrf.mxu1  ;;  %2165 = vmatprep.subr.bf16.mxu1 %v2356_v48 }
 0x32b   : > { %v1451_v5 = vpack.c.bf16 %v1448_v2, %v1445_v3 }
 0x32d   : > { %2166 = vmatpush3.bf16.msra.mxu1 %v2292_v58 }
 0x32e   : > { %2171 = vmatprep.subr.mxu1 %v2356_v48 }
 0x330   : > { %2168 = vmatmul.mubr.msk.bf16.vlgmr.msra.gmra.mxu1 %vm1349_vm5, %v1451_v5 }
 0x331   : > { %2175 = vmatprep.mubr.msk.f32.mxu1 %vm2357_vm3, %v2356_v48 }
 0x3e8   : > { %v2055_v7 = vpop.f32.mrf.mxu1 }
 0x3ea   : > { %v2056_v19 = vpop.f32.mrf.mxu1 }
 0x3eb   : > { %v2057_v25 = vadd.f32 %v2056_v19, %v2055_v7 }
 0x3ec   : > { %v2058_v10 = vpop.f32.mrf.mxu1 }
 0x3ee   : > { %v2059_v12 = vpop.f32.mrf.mxu1 }
 0x3ef   : > { %v2060_v17 = vadd.f32 %v2059_v12, %v2058_v10 }
 0x3f0   : > { %v1674_v21 = vpop.f32.mrf.mxu1 }
 0x3f1   : > { %v1675_v59 = vadd.f32 %v2057_v25, %v1674_v21 }
 0x3f2   : > { %v2169_v6 = vpop.f32.mrf.mxu1 }
 0x3f4   : > { %v1677_v9 = vpop.f32.mrf.mxu1 }
 0x3f5   : > { %v1678_v28 = vadd.f32 %v2060_v17, %v1677_v9 }
 0x3f6   : > { %v2170_v1 = vpop.f32.mrf.mxu1 }
 0x3f7   : > { %2172 = vmatpush3.msk.msra.mxu1 %vm1687_vm6, %v1678_v28 }
 0x3f8   : > { %2173 = vmatprep.subr.mxu1 %v2356_v48 }
 0x3f9   : > { %2174 = vmatpush3.msra.mxu1 %v1675_v59 }
 0x3fa   : > { %2176 = vmatmul.mubr.msk.f32.vlgmr.msra.gmra.mxu1 %vm1683_vm7, %v1681_v29 }
 0x4ba   : > { %v1757_v30 = vpop.f32.mrf.mxu1 }
 0x4bb   : > { %v1758_v11 = vadd.f32 %v1757_v30, %v1682_v26 }
 0x4bc   : > { %v2177_v48 = vpop.f32.mrf.mxu1 }
 0x4bd   : > { %1762 = vst.msk [vmem:[%s324_s24] sm:$0x1] %vm1761_vm8, %v1758_v11 }
 0x4be   : > { %2306 = shalt.err (!%p2303_p3)
}
 0x4bf   : > { %s2307_s22 = scalar_lea.hbm %s2832_s28, 16  ;;  %s2311_s24 = scalar_lea.hbm %s2876_s9, 32 }
 0x4c0   : > { %p2308_p4 = scmp.ne.s32.totalorder %s2832_s28, %s2307_s22  ;;  %p2312_p9 = scmp.lt.s32.totalorder %s2832_s28, %s2876_s9 }
 0x4c1   : > { %p2313_p10 = scmp.lt.s32.totalorder %s2311_s24, %s2307_s22 }
 0x4c2   : > { %p2309_p7 = pnand %p2308_p4, %p2448_p5 }
 0x4c3   : > { %p2314_p11 = por %p2313_p10, %p2312_p9 }
 0x4c4   : > { %p2310_p8 = pneg %p2309_p7 }
 0x4c6   : > { %p2315_p12 = pnand %p2314_p11, %p2310_p8 }
 0x4c8   : > { %2318 = shalt.err (!%p2315_p12)
}
 0x4c9   : > { %2179 = dma.vmem_to_hbm [thread:$0]  (%p2448_p5), %s1777_s25, 16, %s2832_s28, %s1764_s29  }
 0x4ca PF: > { %p2185_p13 = scmp.ge.s32.totalorder %s2353_s12, 2  ;;  %s1788_s14 = sand.u32 1, %s2341_s30  }
 0x4cb   : > { %s1789_s13 = scalar_lea.sflag [#allocation3], %s1788_s14 }
 0x4cc   : > { %p2182_p0 = pnand %p2185_p13, %p2452_p6 }
 0x4ce   : > { %p2183_p1 = pneg %p2182_p0 }
 0x4d0   : > { %2336 = dma.done.wait (%p2183_p1), %s1789_s13, 16  }
 0x4d1   : > { %2338 = vsyncadd (%p2183_p1), %s1789_s13, 4294967280  ;;  %p19_p2 = scmp.ge.s32.totalorder %s2435_s15, 4   ;;  %s2879_s30 = smov %s2345_s10 }
 0x4d2   : > { %s2880_s10 = smov %s2349_s11  ;;  %s2881_s11 = smov %s2446_s18 }
 0x4d3   : > { %s2882_s12 = smov %s2435_s15  ;;  %21 = sbr.rel (!%p19_p2) target bundleno = 3 (0x3), region = 91 }
 0x4d8   :  { %1793 = vsyncpa [#allocation3], 1 }
 0x4d9   :  { %1795 = vsyncpa [#allocation3 + $0x1], 1 }

</bundles_post_ra>
